<compile_context>
chip_gen: v7x
topology: tpu7x:2x2x1
jax: 0.10.0
libtpu: 0.0.40
codegen_flags: <defaults>
</compile_context>

<pallas_src>
import functools

import jax
import jax.numpy as jnp
from jax.experimental import pallas as pl
from jax.experimental.pallas import tpu as pltpu


def _round_up(x, m):
    return ((x + m - 1) // m) * m


def _patch_merging_kernel(x_ref, g_ref, b_ref, w_ref, o_ref, *, c_real, eps):
    # x_ref: (TM, C2p) merged-token rows; g/b: (1, C2p); w: (C2p, C2p); o: (TM, C2p)
    x = x_ref[...].astype(jnp.float32)
    c2p = x.shape[-1]
    inv_c = 1.0 / c_real

    if c_real == c2p:                       # no feature padding: plain LayerNorm stats
        mean = jnp.sum(x, axis=-1, keepdims=True) * inv_c
        xm = x - mean
    else:                                   # mask stats to the real 2C lanes
        lane = jax.lax.broadcasted_iota(jnp.int32, x.shape, 1)
        mask = lane < c_real
        mean = jnp.sum(jnp.where(mask, x, 0.0), axis=-1, keepdims=True) * inv_c
        xm = jnp.where(mask, x - mean, 0.0)

    var = jnp.sum(xm * xm, axis=-1, keepdims=True) * inv_c     # biased, like nn.LayerNorm
    xn = xm * jax.lax.rsqrt(var + eps)
    xn = xn * g_ref[...].astype(jnp.float32) + b_ref[...].astype(jnp.float32)

    # reduction: Linear(2C, 2C, bias=False); w_ref holds reduction.weight.T (padded).
    out = jnp.dot(xn.astype(w_ref.dtype), w_ref[...],
                  preferred_element_type=jnp.float32)
    o_ref[...] = out.astype(o_ref.dtype)


def patch_merging_pallas(x, gamma, beta, w, *, eps=1e-5, tm=256):
    """x: (B, L, C); gamma/beta: (2C,); w: (2C, 2C) == reduction.weight.T.
    Returns (B, ceil(L/2), 2C).  Use tm=128 on v5e (4x128x128 MXU)."""
    B, L, C = x.shape
    C2 = 2 * C
    assert gamma.shape == (C2,) and beta.shape == (C2,) and w.shape == (C2, C2)

    # PyTorch pads an odd trailing token with zeros.
    if L % 2 == 1:
        x = jnp.pad(x, ((0, 0), (0, 1), (0, 0)))
    L2 = x.shape[1] // 2

    # concat(x[:,0::2], x[:,1::2], -1) is a free reshape for even L;
    # then fold batch + merged tokens into one row dimension.
    rows = x.reshape(B * L2, C2)
    R = B * L2

    # Lane-dense feature dim (multiple of 128); sublane-aligned row tile.
    C2p = _round_up(C2, 128)
    tm_eff = min(tm, _round_up(R, 8))
    Rp = _round_up(R, tm_eff)

    rows_p = jnp.pad(rows, ((0, Rp - R), (0, C2p - C2)))
    g_p = jnp.pad(gamma, (0, C2p - C2)).reshape(1, C2p)
    b_p = jnp.pad(beta, (0, C2p - C2)).reshape(1, C2p)
    w_p = jnp.pad(w, ((0, C2p - C2), (0, C2p - C2)))

    # VMEM budget: double-buffered x/out row tiles + the resident (constant-index,
    # DMA'd once) weight + affine params, with headroom.  Keep well under 64 MiB
    # so the same config also fits v7x.
    act_item = max(jnp.dtype(x.dtype).itemsize, 4)
    w_item = jnp.dtype(w.dtype).itemsize
    est = (2 * 2 * tm_eff * C2p * act_item            # x tile + out tile, double-buffered
           + 2 * (C2p * C2p + 2 * C2p) * w_item)      # weight + gamma/beta buffers
    vmem_limit = max(32 << 20, min(int(est) + (8 << 20), 112 << 20))

    out_p = pl.pallas_call(
        functools.partial(_patch_merging_kernel, c_real=C2, eps=eps),
        out_shape=jax.ShapeDtypeStruct((Rp, C2p), x.dtype),
        grid=(Rp // tm_eff,),
        in_specs=[
            pl.BlockSpec((tm_eff, C2p), lambda i: (i, 0)),   # merged-token rows (tiled)
            pl.BlockSpec((1, C2p), lambda i: (0, 0)),        # LayerNorm gamma (resident)
            pl.BlockSpec((1, C2p), lambda i: (0, 0)),        # LayerNorm beta  (resident)
            pl.BlockSpec((C2p, C2p), lambda i: (0, 0)),      # reduction weight (resident)
        ],
        out_specs=pl.BlockSpec((tm_eff, C2p), lambda i: (i, 0)),
        compiler_params=pltpu.CompilerParams(
            dimension_semantics=("parallel",),
            vmem_limit_bytes=vmem_limit,
        ),
    )(rows_p, g_p, b_p, w_p)

    return out_p[:R, :C2].reshape(B, L2, C2)


def patch_merging_ref(x, gamma, beta, w, eps=1e-5):
    """Pure-JAX reference of the PyTorch PatchMerging forward."""
    B, L, C = x.shape
    if L % 2 == 1:
        x = jnp.pad(x, ((0, 0), (0, 1), (0, 0)))
    x0 = x[:, 0::2, :]
    x1 = x[:, 1::2, :]
    xc = jnp.concatenate([x0, x1], axis=-1)                  # (B, L/2, 2C)
    mean = xc.mean(-1, keepdims=True)
    var = ((xc - mean) ** 2).mean(-1, keepdims=True)
    xn = (xc - mean) / jnp.sqrt(var + eps) * gamma + beta
    return xn @ w                                            # w == reduction.weight.T


if __name__ == "__main__":
    B, L, C = 2, 16, 8       # dim=8 -> LayerNorm(16) + Linear(16, 16, bias=False)
    key = jax.random.PRNGKey(0)
    k = jax.random.split(key, 4)
    x = jax.random.normal(k[0], (B, L, C), jnp.float32)
    gamma = 1.0 + 0.1 * jax.random.normal(k[1], (2 * C,), jnp.float32)
    beta = 0.1 * jax.random.normal(k[2], (2 * C,), jnp.float32)
    w = 0.1 * jax.random.normal(k[3], (2 * C, 2 * C), jnp.float32)   # reduction.weight.T

    out = jax.block_until_ready(patch_merging_pallas(x, gamma, beta, w))
    ref = patch_merging_ref(x, gamma, beta, w)
    assert out.shape == (B, L // 2, 2 * C)
    assert jnp.allclose(out, ref, atol=2e-3, rtol=2e-3), float(jnp.max(jnp.abs(out - ref)))

    # Odd-L path (exercises the F.pad branch of the PyTorch forward).
    x_odd = jax.random.normal(jax.random.PRNGKey(1), (B, 9, C), jnp.float32)
    out_odd = jax.block_until_ready(patch_merging_pallas(x_odd, gamma, beta, w))
    ref_odd = patch_merging_ref(x_odd, gamma, beta, w)
    assert out_odd.shape == (B, 5, 2 * C)
    assert jnp.allclose(out_odd, ref_odd, atol=2e-3, rtol=2e-3)

    # Mixed-precision path: bf16 weight operands on the MXU, f32 accumulation.
    out_bf16 = jax.block_until_ready(
        patch_merging_pallas(x, gamma, beta, w.astype(jnp.bfloat16)))
    assert jnp.allclose(out_bf16, ref, atol=1e-1, rtol=1e-1)

    print("KERNEL_OK")
</pallas_src>

<mosaic_0001>
module attributes {stable_mosaic.version = 11 : i64} {
  func.func @_patch_merging_kernel(%arg0: i32, %arg1: memref<16x128xf32, #tpu.memory_space<vmem>>, %arg2: memref<1x128xf32, #tpu.memory_space<vmem>>, %arg3: memref<1x128xf32, #tpu.memory_space<vmem>>, %arg4: memref<128x128xf32, #tpu.memory_space<vmem>>, %arg5: memref<16x128xf32, #tpu.memory_space<vmem>>) attributes {dimension_semantics = [#tpu.dimension_semantics<parallel>], iteration_bounds = array<i64: 1>, scalar_prefetch = 0 : i64, scratch_operands = 0 : i64, tpu.core_type = #tpu.core_type<tc>, window_params = [{transform_indices = @transform_0, window_bounds = array<i64: 16, 128>}, {pipeline_mode = #tpu.pipeline_mode<synchronous>, transform_indices = @transform_1, window_bounds = array<i64: 1, 128>}, {pipeline_mode = #tpu.pipeline_mode<synchronous>, transform_indices = @transform_2, window_bounds = array<i64: 1, 128>}, {pipeline_mode = #tpu.pipeline_mode<synchronous>, transform_indices = @transform_3, window_bounds = array<i64: 128, 128>}, {transform_indices = @transform_4, window_bounds = array<i64: 16, 128>}]} {
    %c0 = arith.constant 0 : index
    %c0_0 = arith.constant 0 : index
    %0 = vector.load %arg1[%c0, %c0_0] : memref<16x128xf32, #tpu.memory_space<vmem>>, vector<16x128xf32>
    %1 = tpu.iota {dimensions = array<i32: 1>} : vector<16x128xi32>
    %c16_i32 = arith.constant 16 : i32
    %2 = vector.broadcast %c16_i32 : i32 to vector<16x128xi32>
    %3 = arith.cmpi slt, %1, %2 : vector<16x128xi32>
    %cst = arith.constant 0.000000e+00 : f32
    %4 = vector.broadcast %cst : f32 to vector<16x128xf32>
    %5 = arith.select %3, %0, %4 : vector<16x128xi1>, vector<16x128xf32>
    %cst_1 = arith.constant dense<0.000000e+00> : vector<16xf32>
    %6 = vector.multi_reduction <add>, %5, %cst_1 [1] : vector<16x128xf32> to vector<16xf32>
    %7 = vector.shape_cast %6 : vector<16xf32> to vector<16x1xf32>
    %cst_2 = arith.constant 6.250000e-02 : f32
    %8 = vector.broadcast %cst_2 : f32 to vector<16x1xf32>
    %9 = arith.mulf %7, %8 : vector<16x1xf32>
    %10 = vector.broadcast %9 : vector<16x1xf32> to vector<16x128xf32>
    %11 = arith.subf %0, %10 : vector<16x128xf32>
    %cst_3 = arith.constant 0.000000e+00 : f32
    %12 = vector.broadcast %cst_3 : f32 to vector<16x128xf32>
    %13 = arith.select %3, %11, %12 : vector<16x128xi1>, vector<16x128xf32>
    %14 = arith.mulf %13, %13 : vector<16x128xf32>
    %cst_4 = arith.constant dense<0.000000e+00> : vector<16xf32>
    %15 = vector.multi_reduction <add>, %14, %cst_4 [1] : vector<16x128xf32> to vector<16xf32>
    %16 = vector.shape_cast %15 : vector<16xf32> to vector<16x1xf32>
    %cst_5 = arith.constant 6.250000e-02 : f32
    %17 = vector.broadcast %cst_5 : f32 to vector<16x1xf32>
    %18 = arith.mulf %16, %17 : vector<16x1xf32>
    %cst_6 = arith.constant 9.99999974E-6 : f32
    %19 = vector.broadcast %cst_6 : f32 to vector<16x1xf32>
    %20 = arith.addf %18, %19 : vector<16x1xf32>
    %21 = math.rsqrt %20 : vector<16x1xf32>
    %22 = vector.broadcast %21 : vector<16x1xf32> to vector<16x128xf32>
    %23 = arith.mulf %13, %22 : vector<16x128xf32>
    %c0_7 = arith.constant 0 : index
    %c0_8 = arith.constant 0 : index
    %24 = vector.load %arg2[%c0_7, %c0_8] : memref<1x128xf32, #tpu.memory_space<vmem>>, vector<1x128xf32>
    %25 = vector.broadcast %24 : vector<1x128xf32> to vector<16x128xf32>
    %26 = arith.mulf %23, %25 : vector<16x128xf32>
    %c0_9 = arith.constant 0 : index
    %c0_10 = arith.constant 0 : index
    %27 = vector.load %arg3[%c0_9, %c0_10] : memref<1x128xf32, #tpu.memory_space<vmem>>, vector<1x128xf32>
    %28 = vector.broadcast %27 : vector<1x128xf32> to vector<16x128xf32>
    %29 = arith.addf %26, %28 : vector<16x128xf32>
    %c0_11 = arith.constant 0 : index
    %c0_12 = arith.constant 0 : index
    %30 = vector.load %arg4[%c0_11, %c0_12] : memref<128x128xf32, #tpu.memory_space<vmem>>, vector<128x128xf32>
    %cst_13 = arith.constant dense<0.000000e+00> : vector<16x128xf32>
    %31 = tpu.matmul %29, %30, %cst_13 {dimension_numbers = #tpu.dot_dimension_numbers<[1], [0], [0], [1], [0, 0, 1, 1], [], []>} : vector<16x128xf32>, vector<128x128xf32>, vector<16x128xf32> -> vector<16x128xf32>
    %c0_14 = arith.constant 0 : index
    %c0_15 = arith.constant 0 : index
    %32 = vector.load %arg5[%c0_14, %c0_15] : memref<16x128xf32, #tpu.memory_space<vmem>>, vector<16x128xf32>
    tpu.vector_store %arg5[%c0_14, %c0_15], %31 {strides = array<i32>} : memref<16x128xf32, #tpu.memory_space<vmem>>, vector<16x128xf32>,
    return
  }
  func.func @transform_0(%arg0: i32) -> (i32, i32) {
    %c0_i32 = arith.constant 0 : i32
    %c0_i32_0 = arith.constant 0 : i32
    return %arg0, %c0_i32 : i32, i32
  }
  func.func @transform_1(%arg0: i32) -> (i32, i32) {
    %c0_i32 = arith.constant 0 : i32
    %c0_i32_0 = arith.constant 0 : i32
    %c0_i32_1 = arith.constant 0 : i32
    return %c0_i32, %c0_i32_0 : i32, i32
  }
  func.func @transform_2(%arg0: i32) -> (i32, i32) {
    %c0_i32 = arith.constant 0 : i32
    %c0_i32_0 = arith.constant 0 : i32
    %c0_i32_1 = arith.constant 0 : i32
    return %c0_i32, %c0_i32_0 : i32, i32
  }
  func.func @transform_3(%arg0: i32) -> (i32, i32) {
    %c0_i32 = arith.constant 0 : i32
    %c0_i32_0 = arith.constant 0 : i32
    %c0_i32_1 = arith.constant 0 : i32
    return %c0_i32, %c0_i32_0 : i32, i32
  }
  func.func @transform_4(%arg0: i32) -> (i32, i32) {
    %c0_i32 = arith.constant 0 : i32
    %c0_i32_0 = arith.constant 0 : i32
    return %arg0, %c0_i32 : i32, i32
  }
}

</mosaic_0001>

<bundles_post_ra>
// kernel: tpu_custom_call.1
= control target key start
LH: loop header
LB: loop body
LE: loop exit
PB: predicated region body
PF: predicated region fallthrough
CT: control target
= control target key end

     0   :  { %9 = vsyncpa [#allocation3], 0  ;;  %s459_s0 = inlined_call_operand.hbm [shape: f32[16,128], index: 0, kind: input, shape index: {}]   ;;  %s460_s1 = inlined_call_operand.vmem [shape: f32[1,128], index: 1, kind: input, shape index: {}]   ;;  %s461_s2 = inlined_call_operand.vmem [shape: f32[1,128], index: 2, kind: input, shape index: {}]   ;;  %s462_s3 = inlined_call_operand.hbm [shape: f32[128,128], index: 3, kind: input, shape index: {}]   ;;  %s463_s4 = inlined_call_operand.hbm [shape: f32[16,128], index: 4, kind: output, shape index: {}]  }
   0x1   :  { %10 = vsyncpa [#allocation6], 0 }
   0x2   :  { %11 = vsyncpa [#allocation4], 0  ;;  %s374_s15 = smov [#allocation2]   ;;  %s302_s19 = scalar_lea.hbm %s459_s0, 256 }
   0x3   :  { %s17_s16 = sshll.u32 %s374_s15, 4  ;;  %p303_p0 = scmp.ne.s32.totalorder %s459_s0, %s302_s19  ;;  %s18_s16 = int_to_ptr.vmem [resolvable:$true] %s17_s16 }
   0x4   :  { %p306_p1 = scmp.lt.u32.totalorder %s302_s19, %s459_s0 }
   0x6   :  { %p308_p2 = pnand %p306_p1, %p303_p0 }
   0x8   :  { %311 = shalt.err (!%p308_p2)
}
   0x9   :  { %s312_s24 = scalar_lea.vmem %s18_s16, 256  ;;  %p317_p4 = scmp.lt.s32.totalorder %s18_s16, %s18_s16 }
   0xa   :  { %p313_p3 = scmp.ne.s32.totalorder %s18_s16, %s312_s24  ;;  %p318_p5 = scmp.lt.s32.totalorder %s312_s24, %s312_s24 }
   0xc   :  { %p319_p6 = por %p318_p5, %p317_p4 }
   0xe   :  { %p320_p7 = pnand %p319_p6, %p313_p3 }
  0x10   :  { %323 = shalt.err (!%p320_p7)
}
  0x11   :  { %s375_s25 = smov 128   ;;  %s376_s26 = smov 8  }
  0x12   :  { %23 = dma.hbm_to_vmem [thread:$0]  %s459_s0, 256, %s18_s16, [#allocation3], %s375_s25, %s375_s25, %s376_s26  }
  0x13   :  { %s377_s29 = smov [#allocation5]   ;;  %s324_s7 = scalar_lea.hbm %s462_s3, 2048 }
  0x14   :  { %s33_s30 = sshll.u32 %s377_s29, 4  ;;  %p325_p8 = scmp.ne.s32.totalorder %s462_s3, %s324_s7  ;;  %s34_s30 = int_to_ptr.vmem [resolvable:$true] %s33_s30 }
  0x15   :  { %p328_p9 = scmp.lt.u32.totalorder %s324_s7, %s462_s3 }
  0x17   :  { %p330_p10 = pnand %p328_p9, %p325_p8 }
  0x19   :  { %333 = shalt.err (!%p330_p10)
}
  0x1a   :  { %s334_s12 = scalar_lea.vmem %s34_s30, 2048  ;;  %p339_p12 = scmp.lt.s32.totalorder %s34_s30, %s34_s30 }
  0x1b   :  { %p335_p11 = scmp.ne.s32.totalorder %s34_s30, %s334_s12  ;;  %p340_p13 = scmp.lt.s32.totalorder %s334_s12, %s334_s12 }
  0x1d   :  { %p341_p0 = por %p340_p13, %p339_p12 }
  0x1f   :  { %p342_p1 = pnand %p341_p0, %p335_p11 }
  0x21   :  { %345 = shalt.err (!%p342_p1)
}
  0x22   :  { %39 = dma.hbm_to_vmem [thread:$0]  %s462_s3, 2048, %s34_s30, [#allocation6], %s375_s25, %s375_s25, %s376_s26  }
  0x23   :  { %368 = dma.done.wait [#allocation3], 256  }
  0x24   :  { %369 = vsyncadd [#allocation3], 4294967040 }
  0x25   :  { %370 = dma.done.wait [#allocation6], 2048  }
  0x26   :  { %371 = vsyncadd [#allocation6], 4294965248  ;;  %v48_v0 = vlaneseq  ;;  %v46_v2 = vld [vmem:[#allocation2] sm:$0xff]  ;;  %v47_v3 = vld [vmem:[#allocation2 + $0x8] sm:$0xff]  ;;  %s378_s17 = smov [#allocation7]  }
  0x27   :  { %v95_v6 = vld [vmem:[#allocation5] sm:$0xff]  ;;  %v96_v7 = vld [vmem:[#allocation5 + $0x8] sm:$0xff]  ;;  %v97_v8 = vld [vmem:[#allocation5 + $0x10] sm:$0xff]  ;;  %s193_s18 = sshll.u32 %s378_s17, 4  ;;  %s194_s18 = int_to_ptr.vmem [resolvable:$true] %s193_s18 }
  0x28   :  { %v49_v1 = vand.u32 127, %v48_v0  ;;  %v261_v9 = vpack.c.bf16 %v96_v7, %v95_v6  ;;  %v98_v10 = vld [vmem:[#allocation5 + $0x18] sm:$0xff]  ;;  %v99_v22 = vld [vmem:[#allocation5 + $0x20] sm:$0xff]  ;;  %v100_v23 = vld [vmem:[#allocation5 + $0x28] sm:$0xff]  ;;  %p351_p3 = scmp.lt.s32.totalorder %s194_s18, %s194_s18 }
  0x29   :  { %v265_v11 = vpack.c.bf16 %v98_v10, %v97_v8  ;;  %v269_v24 = vpack.c.bf16 %v100_v23, %v99_v22  ;;  %v101_v25 = vld [vmem:[#allocation5 + $0x30] sm:$0xff]  ;;  %v102_v26 = vld [vmem:[#allocation5 + $0x38] sm:$0xff]  ;;  %v103_v28 = vld [vmem:[#allocation5 + $0x40] sm:$0xff] }
  0x2a   :  { %vm50_vm0 = vcmp.lt.s32.totalorder %v49_v1, 16  ;;  %262 = vmatprep.subr.bf16.mxu0 %v261_v9  ;;  %v273_v27 = vpack.c.bf16 %v102_v26, %v101_v25  ;;  %v104_v29 = vld [vmem:[#allocation5 + $0x48] sm:$0xff]  ;;  %v105_v31 = vld [vmem:[#allocation5 + $0x50] sm:$0xff]  ;;  %v106_v32 = vld [vmem:[#allocation5 + $0x58] sm:$0xff] }
  0x2b   :  { %v51_v4 = vsel %vm50_vm0, %v46_v2, 0.0  ;;  %v52_v5 = vsel %vm50_vm0, %v47_v3, 0.0  ;;  %264 = vmatpush3.bf16.msra.mxu0 %v261_v9  ;;  %v277_v30 = vpack.c.bf16 %v104_v29, %v103_v28  ;;  %v107_v33 = vld [vmem:[#allocation5 + $0x60] sm:$0xff]  ;;  %v281_v34 = vpack.c.bf16 %v106_v32, %v105_v31  ;;  %v108_v35 = vld [vmem:[#allocation5 + $0x68] sm:$0xff]  ;;  %v109_v37 = vld [vmem:[#allocation5 + $0x70] sm:$0xff] }
  0x2c   :  { %53 = vadd.xlane.f32.xlu0 %v51_v4  ;;  %266 = vmatprep.subr.bf16.mxu0 %v265_v11  ;;  %v285_v36 = vpack.c.bf16 %v108_v35, %v107_v33  ;;  %v110_v38 = vld [vmem:[#allocation5 + $0x78] sm:$0xff]  ;;  %v206_v47 = vld [vmem:[%s460_s1] ss:$0 sm:$0xff]  ;;  %s346_s1 = scalar_lea.vmem %s194_s18, 256 }
  0x2d   :  { %v289_v39 = vpack.c.bf16 %v110_v38, %v109_v37  ;;  %v207_v49 = vld [vmem:[%s461_s2] ss:$0 sm:$0xff]  ;;  %p347_p2 = scmp.ne.s32.totalorder %s194_s18, %s346_s1  ;;  %p352_p4 = scmp.lt.s32.totalorder %s346_s1, %s346_s1 }
  0x2f   :  { %268 = vmatpush3.bf16.msra.mxu0 %v265_v11  ;;  %p353_p5 = por %p352_p4, %p351_p3 }
  0x30   :  { %55 = vadd.xlane.f32.xlu0 %v52_v5  ;;  %270 = vmatprep.subr.bf16.mxu0 %v269_v24 }
  0x31   :  { %p354_p6 = pnand %p353_p5, %p347_p2 }
  0x33   :  { %272 = vmatpush3.bf16.msra.mxu0 %v269_v24 }
  0x34   :  { %274 = vmatprep.subr.bf16.mxu0 %v273_v27 }
  0x37   :  { %276 = vmatpush3.bf16.msra.mxu0 %v273_v27 }
  0x38   :  { %278 = vmatprep.subr.bf16.mxu0 %v277_v30 }
  0x3b   :  { %280 = vmatpush3.bf16.msra.mxu0 %v277_v30 }
  0x3c   :  { %282 = vmatprep.subr.bf16.mxu0 %v281_v34 }
  0x3f   :  { %284 = vmatpush3.bf16.msra.mxu0 %v281_v34 }
  0x40   :  { %286 = vmatprep.subr.bf16.mxu0 %v285_v36 }
  0x43   :  { %288 = vmatpush3.bf16.msra.mxu0 %v285_v36 }
  0x44   :  { %290 = vmatprep.subr.bf16.mxu0 %v289_v39 }
  0x47   :  { %292 = vmatpush3.bf16.msra.mxu0 %v289_v39 }
  0xb9   :  { %v54_v12 = vpop.xlane.xlu0 %53 }
  0xba   :  { %v57_v13 = vmul.f32 0.0625, %v54_v12 }
  0xbc   :  { %v59_v14 = vsub.f32 %v46_v2, %v57_v13 }
  0xbd   :  { %v56_v15 = vpop.xlane.xlu0 %55 }
  0xbe   :  { %v58_v16 = vmul.f32 0.0625, %v56_v15  ;;  %v61_v17 = vsel %vm50_vm0, %v59_v14, 0.0 }
  0xbf   :  { %v63_v18 = vmul.f32 %v61_v17, %v61_v17 }
  0xc0   :  { %v60_v19 = vsub.f32 %v47_v3, %v58_v16 }
  0xc1   :  { %65 = vadd.xlane.f32.xlu1 %v63_v18 }
  0xc2   :  { %v62_v20 = vsel %vm50_vm0, %v60_v19, 0.0 }
  0xc3   :  { %v64_v21 = vmul.f32 %v62_v20, %v62_v20 }
  0xc5   :  { %67 = vadd.xlane.f32.xlu1 %v64_v21 }
 0x14e   :  { %v66_v40 = vpop.xlane.xlu1 %65 }
 0x14f   :  { %v69_v41 = vmul.f32 0.0625, %v66_v40 }
 0x151   :  { %v71_v42 = vadd.f32 1e-05, %v69_v41 }
 0x152   :  { %v68_v43 = vpop.xlane.xlu1 %67 }
 0x153   :  { %298 = vrsqrt.f32 %v71_v42  ;;  %v70_v44 = vmul.f32 0.0625, %v68_v43 }
 0x155   :  { %v72_v45 = vadd.f32 1e-05, %v70_v44 }
 0x157   :  { %300 = vrsqrt.f32 %v72_v45 }
 0x15d   :  { %v299_v46 = vpop.eup %298 }
 0x15e   :  { %v75_v48 = vmul.f32 %v299_v46, %v61_v17 }
 0x160   :  { %v84_v50 = vmul.f32 %v206_v47, %v75_v48 }
 0x161   :  { %v301_v51 = vpop.eup %300 }
 0x162   :  { %v76_v52 = vmul.f32 %v301_v51, %v62_v20  ;;  %v93_v53 = vadd.f32 %v207_v49, %v84_v50 }
 0x164   :  { %v85_v54 = vmul.f32 %v206_v47, %v76_v52  ;;  %258 = vmatprep.mubr.f32.mxu0 %v93_v53 }
 0x166   :  { %v94_v55 = vadd.f32 %v207_v49, %v85_v54 }
 0x168   :  { %259 = vmatmul.mubr.f32.vlgmr.msra.gmra.mrb[0].mxu0 %v94_v55 }
 0x23b   :  { %v260_v56 = vpop.f32.mrb[0].mxu0 }
 0x23c   :  { %187 = vst [vmem:[#allocation7 + $0x8] sm:$0xff] %v260_v56  ;;  %v177_v57 = vpop.f32.mrb[1].mxu0 }
 0x23d   :  { %186 = vst [vmem:[#allocation7] sm:$0xff] %v177_v57 }
 0x23e   :  { %357 = shalt.err (!%p354_p6)
}
 0x23f   :  { %s358_s20 = scalar_lea.hbm %s463_s4, 256 }
 0x240   :  { %p359_p7 = scmp.ne.s32.totalorder %s463_s4, %s358_s20  ;;  %p362_p8 = scmp.lt.u32.totalorder %s358_s20, %s463_s4 }
 0x242   :  { %p364_p9 = pnand %p362_p8, %p359_p7 }
 0x244   :  { %367 = shalt.err (!%p364_p9)
}
 0x245   :  { %199 = dma.vmem_to_hbm [thread:$0]  %s194_s18, 256, %s463_s4, [#allocation4], %s375_s25, %s375_s25, %s376_s26  }
 0x246   :  { %372 = dma.done.wait [#allocation4], 256  }
 0x247   :  { %373 = vsyncadd [#allocation4], 4294967040 }
 0x248   :  { %203 = vsyncpa [#allocation3], 1 }
 0x249   :  { %204 = vsyncpa [#allocation6], 1 }
 0x24a   :  { %205 = vsyncpa [#allocation4], 1 }

</bundles_post_ra>
